<compile_context>
chip_gen: v7x
topology: tpu7x:2x2x1
jax: 0.10.0
libtpu: 0.0.40
codegen_flags: <defaults>
</compile_context>

<pallas_src>
import jax
import jax.numpy as jnp
from jax.experimental import pallas as pl
from jax.experimental.pallas import tpu as pltpu


def _actnorm_kernel(x_ref, loc_ref, scale_ref, o_ref):
    # (tn, C, HW) elementwise with broadcast of (1, C, 1) params: pure VPU work.
    o_ref[...] = (scale_ref[...] * (x_ref[...] + loc_ref[...])).astype(o_ref.dtype)


def actnorm2d_forward(x, loc, scale, *, logdet=False, vmem_budget_bytes=8 << 20):
    """Forward pass of ActNorm2dWrap / ActNorm (affine=True, initialized).

    x:     (N, C, H, W) or (N, C)      -- NCHW like PyTorch
    loc:   (1, C, 1, 1) parameter
    scale: (1, C, 1, 1) parameter
    returns y = scale * (x + loc), same shape as x
            (plus per-sample logdet if logdet=True)
    """
    # TODO(synk): ActNorm's first-call data-dependent init (loc = -mean,
    # scale = 1/(std+1e-6), `initialized` buffer) is stateful training-time
    # logic; parameters are assumed already initialized here.
    squeeze = False
    if x.ndim == 2:
        x = x[:, :, None, None]
        squeeze = True
    N, C, H, W = x.shape
    HW = H * W

    x3 = x.reshape(N, C, HW)                       # lane dim = H*W (lane-dense)
    loc3 = loc.reshape(1, C, 1).astype(x.dtype)    # broadcast in-kernel
    scale3 = scale.reshape(1, C, 1).astype(x.dtype)

    # Batch tile: single grid step when the whole problem fits comfortably in
    # VMEM (input + output, double-buffered); otherwise tile the batch axis.
    bytes_per_row = 2 * 2 * C * HW * x.dtype.itemsize
    tn = int(max(1, min(N, vmem_budget_bytes // max(1, bytes_per_row))))
    grid = (pl.cdiv(N, tn),)

    out3 = pl.pallas_call(
        _actnorm_kernel,
        out_shape=jax.ShapeDtypeStruct((N, C, HW), x.dtype),
        grid_spec=pltpu.PrefetchScalarGridSpec(
            num_scalar_prefetch=0,
            grid=grid,
            in_specs=[
                pl.BlockSpec((tn, C, HW), lambda i: (i, 0, 0)),  # x tile
                pl.BlockSpec((1, C, 1), lambda i: (0, 0, 0)),    # loc (resident)
                pl.BlockSpec((1, C, 1), lambda i: (0, 0, 0)),    # scale (resident)
            ],
            out_specs=pl.BlockSpec((tn, C, HW), lambda i: (i, 0, 0)),
        ),
        compiler_params=pltpu.CompilerParams(
            dimension_semantics=("parallel",),  # independent batch rows
        ),
    )(x3, loc3, scale3)

    h = out3.reshape(N, C, H, W)
    if squeeze:
        h = h[:, :, 0, 0]
    if logdet:
        # Parameter-only scalar (independent of x); not worth a kernel.
        log_abs = jnp.log(jnp.abs(scale.reshape(-1)))
        ld = (H * W) * jnp.sum(log_abs)
        return h, ld * jnp.ones((N,), dtype=x.dtype)
    return h


if __name__ == "__main__":
    batch, channels, spatial = 2, 4, 16
    key = jax.random.PRNGKey(0)
    kx, kl, ks = jax.random.split(key, 3)

    x = jax.random.normal(kx, (batch, channels, spatial, spatial), dtype=jnp.float32)
    # Synthetic "already-initialized" ActNorm parameters (nn.Parameter shapes).
    loc = 0.1 * jax.random.normal(kl, (1, channels, 1, 1), dtype=jnp.float32)
    scale = 1.0 + 0.1 * jax.random.normal(ks, (1, channels, 1, 1), dtype=jnp.float32)

    y = actnorm2d_forward(x, loc, scale)
    y = jax.block_until_ready(y)

    # Reference: plain JAX broadcast of the same affine.
    y_ref = scale * (x + loc)

    assert y.shape == x.shape
    assert jnp.allclose(y, y_ref, atol=1e-6, rtol=1e-6)

    print("KERNEL_OK")
</pallas_src>

<mosaic_0001>
module attributes {stable_mosaic.version = 11 : i64} {
  func.func @_actnorm_kernel(%arg0: i32, %arg1: memref<2x4x256xf32, #tpu.memory_space<vmem>>, %arg2: memref<1x4x1xf32, #tpu.memory_space<vmem>>, %arg3: memref<1x4x1xf32, #tpu.memory_space<vmem>>, %arg4: memref<2x4x256xf32, #tpu.memory_space<vmem>>) attributes {dimension_semantics = [#tpu.dimension_semantics<parallel>], iteration_bounds = array<i64: 1>, scalar_prefetch = 0 : i64, scratch_operands = 0 : i64, tpu.core_type = #tpu.core_type<tc>, window_params = [{transform_indices = @transform_0, window_bounds = array<i64: 2, 4, 256>}, {pipeline_mode = #tpu.pipeline_mode<synchronous>, transform_indices = @transform_1, window_bounds = array<i64: 1, 4, 1>}, {pipeline_mode = #tpu.pipeline_mode<synchronous>, transform_indices = @transform_2, window_bounds = array<i64: 1, 4, 1>}, {transform_indices = @transform_3, window_bounds = array<i64: 2, 4, 256>}]} {
    %c0 = arith.constant 0 : index
    %c0_0 = arith.constant 0 : index
    %c0_1 = arith.constant 0 : index
    %0 = vector.load %arg3[%c0, %c0_0, %c0_1] : memref<1x4x1xf32, #tpu.memory_space<vmem>>, vector<1x4x1xf32>
    %c0_2 = arith.constant 0 : index
    %c0_3 = arith.constant 0 : index
    %c0_4 = arith.constant 0 : index
    %1 = vector.load %arg1[%c0_2, %c0_3, %c0_4] : memref<2x4x256xf32, #tpu.memory_space<vmem>>, vector<2x4x256xf32>
    %c0_5 = arith.constant 0 : index
    %c0_6 = arith.constant 0 : index
    %c0_7 = arith.constant 0 : index
    %2 = vector.load %arg2[%c0_5, %c0_6, %c0_7] : memref<1x4x1xf32, #tpu.memory_space<vmem>>, vector<1x4x1xf32>
    %3 = vector.broadcast %2 : vector<1x4x1xf32> to vector<2x4x256xf32>
    %4 = arith.addf %1, %3 : vector<2x4x256xf32>
    %5 = vector.broadcast %0 : vector<1x4x1xf32> to vector<2x4x256xf32>
    %6 = arith.mulf %5, %4 : vector<2x4x256xf32>
    %c0_8 = arith.constant 0 : index
    %c0_9 = arith.constant 0 : index
    %c0_10 = arith.constant 0 : index
    %7 = vector.load %arg4[%c0_8, %c0_9, %c0_10] : memref<2x4x256xf32, #tpu.memory_space<vmem>>, vector<2x4x256xf32>
    tpu.vector_store %arg4[%c0_8, %c0_9, %c0_10], %6 {strides = array<i32>} : memref<2x4x256xf32, #tpu.memory_space<vmem>>, vector<2x4x256xf32>,
    return
  }
  func.func @transform_0(%arg0: i32) -> (i32, i32, i32) {
    %c0_i32 = arith.constant 0 : i32
    %c0_i32_0 = arith.constant 0 : i32
    %c0_i32_1 = arith.constant 0 : i32
    return %arg0, %c0_i32, %c0_i32_0 : i32, i32, i32
  }
  func.func @transform_1(%arg0: i32) -> (i32, i32, i32) {
    %c0_i32 = arith.constant 0 : i32
    %c0_i32_0 = arith.constant 0 : i32
    %c0_i32_1 = arith.constant 0 : i32
    %c0_i32_2 = arith.constant 0 : i32
    return %c0_i32, %c0_i32_0, %c0_i32_1 : i32, i32, i32
  }
  func.func @transform_2(%arg0: i32) -> (i32, i32, i32) {
    %c0_i32 = arith.constant 0 : i32
    %c0_i32_0 = arith.constant 0 : i32
    %c0_i32_1 = arith.constant 0 : i32
    %c0_i32_2 = arith.constant 0 : i32
    return %c0_i32, %c0_i32_0, %c0_i32_1 : i32, i32, i32
  }
  func.func @transform_3(%arg0: i32) -> (i32, i32, i32) {
    %c0_i32 = arith.constant 0 : i32
    %c0_i32_0 = arith.constant 0 : i32
    %c0_i32_1 = arith.constant 0 : i32
    return %arg0, %c0_i32, %c0_i32_0 : i32, i32, i32
  }
}

</mosaic_0001>

<bundles_post_ra>
// kernel: tpu_custom_call.1
= control target key start
LH: loop header
LB: loop body
LE: loop exit
PB: predicated region body
PF: predicated region fallthrough
CT: control target
= control target key end

     0   :  { %8 = vsyncpa [#allocation3], 0  ;;  %s206_s0 = inlined_call_operand.hbm [shape: f32[2,4,256], index: 0, kind: input, shape index: {}]   ;;  %s207_s1 = inlined_call_operand.vmem [shape: f32[1,4,1], index: 1, kind: input, shape index: {}]   ;;  %s208_s2 = inlined_call_operand.vmem [shape: f32[1,4,1], index: 2, kind: input, shape index: {}]   ;;  %s209_s3 = inlined_call_operand.hbm [shape: f32[2,4,256], index: 3, kind: output, shape index: {}]  }
   0x1   :  { %9 = vsyncpa [#allocation4], 0  ;;  %s144_s12 = smov [#allocation2]   ;;  %s96_s16 = scalar_lea.hbm %s206_s0, 256 }
   0x2   :  { %s15_s13 = sshll.u32 %s144_s12, 4  ;;  %p97_p0 = scmp.ne.s32.totalorder %s206_s0, %s96_s16  ;;  %s16_s13 = int_to_ptr.vmem [resolvable:$true] %s15_s13 }
   0x3   :  { %p100_p1 = scmp.lt.u32.totalorder %s96_s16, %s206_s0 }
   0x5   :  { %p102_p2 = pnand %p100_p1, %p97_p0 }
   0x7   :  { %105 = shalt.err (!%p102_p2)
}
   0x8   :  { %s106_s21 = scalar_lea.vmem %s16_s13, 256  ;;  %p111_p4 = scmp.lt.s32.totalorder %s16_s13, %s16_s13 }
   0x9   :  { %p107_p3 = scmp.ne.s32.totalorder %s16_s13, %s106_s21  ;;  %p112_p5 = scmp.lt.s32.totalorder %s106_s21, %s106_s21 }
   0xb   :  { %p113_p6 = por %p112_p5, %p111_p4 }
   0xd   :  { %p114_p7 = pnand %p113_p6, %p107_p3 }
   0xf   :  { %117 = shalt.err (!%p114_p7)
}
  0x10   :  { %s145_s22 = smov 128   ;;  %s146_s23 = smov 8  }
  0x11   :  { %21 = dma.hbm_to_vmem [thread:$0]  %s206_s0, 256, %s16_s13, [#allocation3], %s145_s22, %s145_s22, %s146_s23  }
  0x12   :  { %140 = dma.done.wait [#allocation3], 256  }
  0x13   :  { %141 = vsyncadd [#allocation3], 4294967040  ;;  %v147_v0 = vmov 0   ;;  %v32_v1 = vld [vmem:[%s207_s1] sm:$0xf]  ;;  %v40_v5 = vlaneseq  ;;  %v31_v11 = vld [vmem:[#allocation2 + $0x8] sm:$0xff] }
  0x14   :  { %95 = vset.pattern.permute.xlu0 %v147_v0  ;;  %v29_v2 = vld [vmem:[%s208_s2] sm:$0xf]  ;;  %v148_v3 = vmov 839922192   ;;  %s149_s0 = smov [#allocation5]  }
  0x15   :  { %35 = vperm.xlu0 %95, %v32_v1   ;;  %v38_v4 = vunpack.c.l.s4 %v148_v3  ;;  %v41_v7 = vshrl.u32 %v40_v5, 7  ;;  %v30_v10 = vld [vmem:[#allocation2] sm:$0xff]  ;;  %s77_s1 = sshll.u32 %s149_s0, 4  ;;  %s78_s1 = int_to_ptr.vmem [resolvable:$true] %s77_s1 }
  0x16   :  { %s118_s2 = scalar_lea.vmem %s78_s1, 256  ;;  %p123_p9 = scmp.lt.s32.totalorder %s78_s1, %s78_s1 }
  0x17   :  { %v39_v6 = vunpack.c.0.s8 %v38_v4  ;;  %p119_p8 = scmp.ne.s32.totalorder %s78_s1, %s118_s2  ;;  %p124_p10 = scmp.lt.s32.totalorder %s118_s2, %s118_s2 }
  0x19   :  { %49 = vperm.xlu0 %95, %v29_v2   ;;  %v42_v8 = vsub.s32 %v39_v6, %v41_v7  ;;  %p125_p11 = por %p124_p10, %p123_p9 }
  0x1b   :  { %p126_p12 = pnand %p125_p11, %p119_p8 }
  0x94   :  { %v36_v9 = vpop.permute.xlu0 %35 }
  0x95   :  { %v43_v12 = vrot.slane %v36_v9, %v42_v8 }
  0x97   :  { %v45_v13 = vadd.f32 %v43_v12, %v30_v10  ;;  %v46_v14 = vadd.f32 %v43_v12, %v31_v11 }
  0x98   :  { %v50_v15 = vpop.permute.xlu0 %49 }
  0x99   :  { %v54_v16 = vcombine.high %v45_v13, %v45_v13  ;;  %v55_v17 = vcombine.high %v46_v14, %v46_v14  ;;  %v58_v18 = vmul.f32 %v50_v15, %v45_v13  ;;  %v60_v20 = vmul.f32 %v50_v15, %v46_v14 }
  0x9b   :  { %v59_v19 = vmul.f32 %v54_v16, %v50_v15  ;;  %v61_v21 = vmul.f32 %v55_v17, %v50_v15 }
  0x9d   :  { %v66_v22 = vcombine.low %v58_v18, %v59_v19  ;;  %v67_v23 = vcombine.low %v60_v20, %v61_v21 }
  0x9f   :  { %70 = vst [vmem:[#allocation5] sm:$0xff] %v66_v22  ;;  %71 = vst [vmem:[#allocation5 + $0x8] sm:$0xff] %v67_v23 }
  0xa0   :  { %129 = shalt.err (!%p126_p12)
}
  0xa1   :  { %s130_s5 = scalar_lea.hbm %s209_s3, 256 }
  0xa2   :  { %p131_p13 = scmp.ne.s32.totalorder %s209_s3, %s130_s5  ;;  %p134_p0 = scmp.lt.u32.totalorder %s130_s5, %s209_s3 }
  0xa4   :  { %p136_p1 = pnand %p134_p0, %p131_p13 }
  0xa6   :  { %139 = shalt.err (!%p136_p1)
}
  0xa7   :  { %83 = dma.vmem_to_hbm [thread:$0]  %s78_s1, 256, %s209_s3, [#allocation4], %s145_s22, %s145_s22, %s146_s23  }
  0xa8   :  { %142 = dma.done.wait [#allocation4], 256  }
  0xa9   :  { %143 = vsyncadd [#allocation4], 4294967040 }
  0xaa   :  { %87 = vsyncpa [#allocation3], 1 }
  0xab   :  { %88 = vsyncpa [#allocation4], 1 }

</bundles_post_ra>
